<compile_context>
chip_gen: v5e
topology: v5e:2x2
jax: 0.10.0
libtpu: 0.0.40
codegen_flags: <defaults>
</compile_context>

<pallas_src>
import functools

import jax
import jax.numpy as jnp
from jax.experimental import pallas as pl
from jax.experimental.pallas import tpu as pltpu

_LANES = 128              # lane width of a vreg
_SUBLANES = 8             # sublane count of a vreg
_MAX_BLOCK_ROWS = 4096    # 4096 rows x 128 lanes x 4 B = 2 MiB f32 per block


def _round_up(v: int, m: int) -> int:
    return ((v + m - 1) // m) * m


def _linear_kernel(w_ref, b_ref, x_ref, o_ref):
    # w_ref / b_ref are (1,) scalars in SMEM; x_ref / o_ref are
    # (block_rows, _LANES) VMEM tiles.  Hoist scalar reads once.
    w = w_ref[0]
    b = b_ref[0]
    o_ref[...] = x_ref[...] * w + b   # VPU elementwise == the whole matmul (K=1)


@functools.partial(jax.jit, static_argnames=())
def linear_regression_v2(x, weight, bias):
    """x: (N, 1) f32, weight: (1, 1) f32, bias: (1,) f32 -> (N, 1) f32."""
    n, f = x.shape
    assert f == 1 and weight.shape == (1, 1) and bias.shape == (1,)
    dtype = x.dtype

    # --- lane-dense re-layout (row-major (N,1) == flat N) ---------------------
    # Pad only to a multiple of one vreg (8 * 128 elements), not a full block:
    # for typical N this is a no-op, and at worst pads <= 1023 elements.
    pad_granule = _SUBLANES * _LANES
    n_pad = _round_up(n, pad_granule)
    x_flat = x.reshape(n)
    if n_pad != n:
        x_flat = jnp.pad(x_flat, (0, n_pad - n))
    rows = n_pad // _LANES
    x2d = x_flat.reshape(rows, _LANES)

    # Block sizing: as large as possible (up to 2 MiB), but clamped so that the
    # grid has >= 2 steps when the input is big enough -> both TCs get work on
    # v7x.  block_rows stays a multiple of 8 to satisfy the (8, 128) rule.
    block_rows = min(_MAX_BLOCK_ROWS, max(_SUBLANES, _round_up(pl.cdiv(rows, 2), _SUBLANES)))
    grid = (pl.cdiv(rows, block_rows),)

    w_flat = weight.reshape((1,))
    itemsize = jnp.dtype(dtype).itemsize

    y2d = pl.pallas_call(
        _linear_kernel,
        out_shape=jax.ShapeDtypeStruct((rows, _LANES), dtype),
        grid=grid,
        in_specs=[
            pl.BlockSpec(memory_space=pltpu.SMEM),                        # weight scalar
            pl.BlockSpec(memory_space=pltpu.SMEM),                        # bias scalar
            pl.BlockSpec((block_rows, _LANES), lambda i: (i, 0)),         # x row block
        ],
        out_specs=pl.BlockSpec((block_rows, _LANES), lambda i: (i, 0)),
        compiler_params=pltpu.CompilerParams(
            dimension_semantics=("parallel",),          # use both TCs on v7x
            vmem_limit_bytes=32 * 1024 * 1024,          # portable across v5e/v6e/v7x
        ),
        cost_estimate=pl.CostEstimate(
            flops=2 * n_pad,                            # 1 mul + 1 add per element
            transcendentals=0,
            bytes_accessed=2 * n_pad * itemsize,        # read x + write y
        ),
    )(w_flat, bias, x2d)

    # Undo the lane-dense re-layout: slab -> flat -> slice padding -> (N, 1).
    # Under jit this is a cheap fused slice, not a second HBM round trip.
    return y2d.reshape(n_pad)[:n].reshape(n, 1)


if __name__ == "__main__":
    key = jax.random.PRNGKey(0)
    k_x, k_w, k_b = jax.random.split(key, 3)

    # PyTorch nn.Linear(1, 1) default init: uniform(-1, 1) since fan_in = 1.
    weight = jax.random.uniform(k_w, (1, 1), jnp.float32, minval=-1.0, maxval=1.0)
    bias = jax.random.uniform(k_b, (1,), jnp.float32, minval=-1.0, maxval=1.0)

    # Small example input: batch of 8 scalar features, shape (8, 1).
    x = jax.random.normal(k_x, (8, 1), jnp.float32)

    y = linear_regression_v2(x, weight, bias)
    y = jax.block_until_ready(y)

    # Reference check in plain JAX.
    y_ref = x @ weight.T + bias
    assert y.shape == (8, 1)
    assert jnp.allclose(y, y_ref, atol=1e-6), (y, y_ref)

    # Also exercise a padded / multi-block shape to cover the cdiv-grid path.
    x_big = jax.random.normal(k_x, (3000, 1), jnp.float32)
    y_big = jax.block_until_ready(linear_regression_v2(x_big, weight, bias))
    assert y_big.shape == (3000, 1)
    assert jnp.allclose(y_big, x_big @ weight.T + bias, atol=1e-6)

    print("KERNEL_OK")
</pallas_src>

<mosaic_0001>
module attributes {stable_mosaic.version = 11 : i64} {
  func.func @_linear_kernel(%arg0: i32, %arg1: memref<1xf32, #tpu.memory_space<smem>>, %arg2: memref<1xf32, #tpu.memory_space<smem>>, %arg3: memref<8x128xf32, #tpu.memory_space<vmem>>, %arg4: memref<8x128xf32, #tpu.memory_space<vmem>>) attributes {dimension_semantics = [#tpu.dimension_semantics<parallel>], iteration_bounds = array<i64: 1>, scalar_prefetch = 0 : i64, scratch_operands = 0 : i64, tpu.core_type = #tpu.core_type<tc>, window_params = [{transform_indices = @transform_0, window_bounds = array<i64: 1>}, {transform_indices = @transform_1, window_bounds = array<i64: 1>}, {transform_indices = @transform_2, window_bounds = array<i64: 8, 128>}, {transform_indices = @transform_3, window_bounds = array<i64: 8, 128>}]} {
    %c0 = arith.constant 0 : index
    %0 = memref.load %arg1[%c0] : memref<1xf32, #tpu.memory_space<smem>>
    %c0_0 = arith.constant 0 : index
    %1 = memref.load %arg2[%c0_0] : memref<1xf32, #tpu.memory_space<smem>>
    %c0_1 = arith.constant 0 : index
    %c0_2 = arith.constant 0 : index
    %2 = vector.load %arg3[%c0_1, %c0_2] : memref<8x128xf32, #tpu.memory_space<vmem>>, vector<8x128xf32>
    %3 = vector.broadcast %0 : f32 to vector<8x128xf32>
    %4 = arith.mulf %2, %3 : vector<8x128xf32>
    %5 = vector.broadcast %1 : f32 to vector<8x128xf32>
    %6 = arith.addf %4, %5 : vector<8x128xf32>
    %c0_3 = arith.constant 0 : index
    %c0_4 = arith.constant 0 : index
    %7 = vector.load %arg4[%c0_3, %c0_4] : memref<8x128xf32, #tpu.memory_space<vmem>>, vector<8x128xf32>
    tpu.vector_store %arg4[%c0_3, %c0_4], %6 {strides = array<i32>} : memref<8x128xf32, #tpu.memory_space<vmem>>, vector<8x128xf32>,
    return
  }
  func.func @transform_0(%arg0: i32) -> i32 {
    %c0_i32 = arith.constant 0 : i32
    %c0_i32_0 = arith.constant 0 : i32
    return %c0_i32 : i32
  }
  func.func @transform_1(%arg0: i32) -> i32 {
    %c0_i32 = arith.constant 0 : i32
    %c0_i32_0 = arith.constant 0 : i32
    return %c0_i32 : i32
  }
  func.func @transform_2(%arg0: i32) -> (i32, i32) {
    %c0_i32 = arith.constant 0 : i32
    %c0_i32_0 = arith.constant 0 : i32
    return %arg0, %c0_i32 : i32, i32
  }
  func.func @transform_3(%arg0: i32) -> (i32, i32) {
    %c0_i32 = arith.constant 0 : i32
    %c0_i32_0 = arith.constant 0 : i32
    return %arg0, %c0_i32 : i32, i32
  }
}

</mosaic_0001>

<bundles_post_ra>
// kernel: linear_regression_v2.1
= control target key start
LH: loop header
LB: loop body
LE: loop exit
PB: predicated region body
PF: predicated region fallthrough
CT: control target
= control target key end

     0   :  { %s60_s0 = inlined_call_operand.<no memory space> [shape: f32[1], index: 0, kind: input, shape index: {}]   ;;  %s61_s1 = inlined_call_operand.<no memory space> [shape: f32[1], index: 1, kind: input, shape index: {}]   ;;  %s62_s2 = inlined_call_operand.vmem [shape: f32[8,128], index: 2, kind: input, shape index: {}]   ;;  %s63_s3 = inlined_call_operand.vmem [shape: f32[8,128], index: 3, kind: output, shape index: {}]  }
   0x1   :  { %v18_v0 = vld [vmem:[%s62_s2] sm:$0xff]  ;;  %v19_v1 = vstv %s60_s0  ;;  %v21_v2 = vstv %s61_s1 }
   0x2   :  { %v20_v3 = vmul.f32 %v19_v1, %v18_v0 }
   0x4   :  { %v22_v4 = vadd.f32 %v21_v2, %v20_v3 }
   0x6   :  { %23 = vst [vmem:[%s63_s3] sm:$0xff] %v22_v4 }

</bundles_post_ra>
